<compile_context>
chip_gen: v7x
topology: tpu7x:2x2x1
jax: 0.10.0
libtpu: 0.0.40
codegen_flags: <defaults>
</compile_context>

<pallas_src>
import jax
import jax.numpy as jnp
from jax import lax
from jax.experimental import pallas as pl
from jax.experimental.pallas import tpu as pltpu

C_IN = 3
C_OUT = 1
K = 3
STRIDE = 1
PAD = 1
DIL = 2
OUT_PAD = 2

PAD_LO = DIL * (K - 1) - PAD          # 3
PAD_HI = PAD_LO + OUT_PAD             # 5


def _convt_kernel(wb_ref, x_ref, o_ref):
    # wb_ref : SMEM f32[C_IN*K*K + 1]   flattened weight (ci, kh, kw) + bias
    # x_ref  : VMEM (bn, C_IN, h, w)    raw (unpadded) input, one batch tile
    # o_ref  : VMEM (bn, C_OUT, h_out, w_out)
    bn, _, h, w = x_ref.shape
    h_out = o_ref.shape[2]
    w_out = o_ref.shape[3]
    h_pad = h + PAD_LO + PAD_HI
    w_pad = w + PAD_LO + PAD_HI

    bias = wb_ref[C_IN * K * K]

    # Deferred-shift accumulators, keyed by kernel-column index b, held at the
    # full padded lane width so the inner loop is a pure multiply-add.
    acc = [
        jnp.full((bn, h_out, w_pad), bias, dtype=jnp.float32),   # b = 0 (carries bias)
        jnp.zeros((bn, h_out, w_pad), dtype=jnp.float32),        # b = 1
        jnp.zeros((bn, h_out, w_pad), dtype=jnp.float32),        # b = 2
    ]

    # In-register zero padding pieces (built once, reused for every channel).
    zt = jnp.zeros((bn, PAD_LO, w), dtype=jnp.float32)
    zb = jnp.zeros((bn, PAD_HI, w), dtype=jnp.float32)
    zl = jnp.zeros((bn, h_pad, PAD_LO), dtype=jnp.float32)
    zr = jnp.zeros((bn, h_pad, PAD_HI), dtype=jnp.float32)

    # out[oh, ow] = bias + sum_{ci,a,b} x_pad[ci, oh + DIL*a, ow + DIL*b]
    #                                   * weight[ci, 0, K-1-a, K-1-b]
    for ci in range(C_IN):
        xplane = x_ref[:, ci, :, :]                                  # one plane load
        plane = jnp.concatenate([zt, xplane, zb], axis=1)            # pad rows (sublanes)
        plane = jnp.concatenate([zl, plane, zr], axis=2)             # pad cols (lanes)
        for a in range(K):
            # In-register sublane window of the already-loaded padded plane.
            strip = plane[:, a * DIL:a * DIL + h_out, :]             # (bn, h_out, w_pad)
            for b in range(K):
                w_s = wb_ref[ci * K * K + (K - 1 - a) * K + (K - 1 - b)]
                acc[b] = acc[b] + strip * w_s                        # no per-tap slice

    # Apply the two deferred lane shifts + final width slice once.
    v1 = (acc[0][:, :, 0:w_out]
          + acc[1][:, :, DIL:DIL + w_out]
          + acc[2][:, :, 2 * DIL:2 * DIL + w_out])

    out = jnp.where(v1 > 0, v1, jax.nn.sigmoid(v1))
    o_ref[:, 0, :, :] = out.astype(o_ref.dtype)


def model_forward(x, weight, bias):
    """x: (N, C_IN, H, W) f32; weight: (C_IN, C_OUT, K, K) f32; bias: (C_OUT,) f32."""
    n, c, h, w = x.shape
    assert c == C_IN and weight.shape == (C_IN, C_OUT, K, K)

    h_out = (h - 1) * STRIDE - 2 * PAD + DIL * (K - 1) + OUT_PAD + 1
    w_out = (w - 1) * STRIDE - 2 * PAD + DIL * (K - 1) + OUT_PAD + 1
    assert h_out == h + PAD_LO + PAD_HI - (K - 1) * DIL
    assert w_out == w + PAD_LO + PAD_HI - (K - 1) * DIL

    wb = jnp.concatenate(
        [weight[:, 0, :, :].reshape(-1), bias.reshape(-1)]).astype(jnp.float32)

    bn = 1                      # one image per grid step -> batch-parallel grid
    grid = (n // bn,)

    return pl.pallas_call(
        _convt_kernel,
        out_shape=jax.ShapeDtypeStruct((n, C_OUT, h_out, w_out), jnp.float32),
        grid=grid,
        in_specs=[
            pl.BlockSpec(memory_space=pltpu.MemorySpace.SMEM),           # weights+bias
            pl.BlockSpec((bn, C_IN, h, w), lambda i: (i, 0, 0, 0)),      # input tile
        ],
        out_specs=pl.BlockSpec((bn, C_OUT, h_out, w_out), lambda i: (i, 0, 0, 0)),
        compiler_params=pltpu.CompilerParams(
            dimension_semantics=("parallel",)),
    )(wb, x)


def _reference(x, weight, bias):
    """Pure-JAX reference of the same transposed conv + epilogue."""
    x_pad = jnp.pad(x, ((0, 0), (0, 0), (PAD_LO, PAD_HI), (PAD_LO, PAD_HI)))
    # Flip kernel and swap to OIHW.
    w_flip = jnp.transpose(weight[:, :, ::-1, ::-1], (1, 0, 2, 3))
    v1 = lax.conv_general_dilated(
        x_pad, w_flip, window_strides=(1, 1), padding="VALID",
        rhs_dilation=(DIL, DIL),
        dimension_numbers=("NCHW", "OIHW", "NCHW"),
    ) + bias.reshape(1, C_OUT, 1, 1)
    return jnp.where(v1 > 0, v1, jax.nn.sigmoid(v1))


if __name__ == "__main__":
    key = jax.random.PRNGKey(0)
    kx, kw, kb = jax.random.split(key, 3)

    # Small shapes consistent with the module's forward (in_channels must be 3).
    x = jax.random.normal(kx, (2, 3, 13, 11), dtype=jnp.float32)
    weight = jax.random.normal(kw, (C_IN, C_OUT, K, K), dtype=jnp.float32) * 0.1
    bias = jax.random.normal(kb, (C_OUT,), dtype=jnp.float32) * 0.1

    out = jax.block_until_ready(model_forward(x, weight, bias))

    ref = _reference(x, weight, bias)
    assert out.shape == (2, 1, 17, 15), out.shape
    assert jnp.allclose(out, ref, atol=1e-5, rtol=1e-5), "mismatch vs reference"

    print("KERNEL_OK")
</pallas_src>

<mosaic_0001>
module attributes {stable_mosaic.version = 11 : i64} {
  func.func @_convt_kernel(%arg0: i32, %arg1: memref<28xf32, #tpu.memory_space<smem>>, %arg2: memref<1x3x13x11xf32, #tpu.memory_space<vmem>>, %arg3: memref<1x1x17x15xf32, #tpu.memory_space<vmem>>) attributes {dimension_semantics = [#tpu.dimension_semantics<parallel>], iteration_bounds = array<i64: 2>, scalar_prefetch = 0 : i64, scratch_operands = 0 : i64, tpu.core_type = #tpu.core_type<tc>, window_params = [{transform_indices = @transform_0, window_bounds = array<i64: 28>}, {transform_indices = @transform_1, window_bounds = array<i64: 1, 3, 13, 11>}, {transform_indices = @transform_2, window_bounds = array<i64: 1, 1, 17, 15>}]} {
    %c27 = arith.constant 27 : index
    %0 = memref.load %arg1[%c27] : memref<28xf32, #tpu.memory_space<smem>>
    %1 = vector.broadcast %0 : f32 to vector<1x17x19xf32>
    %cst = arith.constant 0.000000e+00 : f32
    %2 = vector.broadcast %cst : f32 to vector<1x17x19xf32>
    %cst_0 = arith.constant 0.000000e+00 : f32
    %3 = vector.broadcast %cst_0 : f32 to vector<1x17x19xf32>
    %cst_1 = arith.constant 0.000000e+00 : f32
    %4 = vector.broadcast %cst_1 : f32 to vector<1x3x11xf32>
    %cst_2 = arith.constant 0.000000e+00 : f32
    %5 = vector.broadcast %cst_2 : f32 to vector<1x5x11xf32>
    %cst_3 = arith.constant 0.000000e+00 : f32
    %6 = vector.broadcast %cst_3 : f32 to vector<1x21x3xf32>
    %cst_4 = arith.constant 0.000000e+00 : f32
    %7 = vector.broadcast %cst_4 : f32 to vector<1x21x5xf32>
    %c0 = arith.constant 0 : index
    %c0_5 = arith.constant 0 : index
    %c0_6 = arith.constant 0 : index
    %c0_7 = arith.constant 0 : index
    %8 = vector.load %arg2[%c0, %c0_5, %c0_6, %c0_7] : memref<1x3x13x11xf32, #tpu.memory_space<vmem>>, vector<1x1x13x11xf32>
    %9 = vector.shape_cast %8 : vector<1x1x13x11xf32> to vector<1x13x11xf32>
    %10 = tpu.concatenate %4, %9, %5 in 1 : vector<1x3x11xf32>, vector<1x13x11xf32>, vector<1x5x11xf32> -> vector<1x21x11xf32>
    %11 = tpu.concatenate %6, %10, %7 in 2 : vector<1x21x3xf32>, vector<1x21x11xf32>, vector<1x21x5xf32> -> vector<1x21x19xf32>
    %12 = vector.extract_strided_slice %11 {offsets = [0, 0, 0], sizes = [1, 17, 19], strides = [1, 1, 1]} : vector<1x21x19xf32> to vector<1x17x19xf32>
    %c8 = arith.constant 8 : index
    %13 = memref.load %arg1[%c8] : memref<28xf32, #tpu.memory_space<smem>>
    %14 = vector.broadcast %13 : f32 to vector<1x17x19xf32>
    %15 = arith.mulf %12, %14 : vector<1x17x19xf32>
    %16 = arith.addf %1, %15 : vector<1x17x19xf32>
    %c7 = arith.constant 7 : index
    %17 = memref.load %arg1[%c7] : memref<28xf32, #tpu.memory_space<smem>>
    %18 = vector.broadcast %17 : f32 to vector<1x17x19xf32>
    %19 = arith.mulf %12, %18 : vector<1x17x19xf32>
    %20 = arith.addf %2, %19 : vector<1x17x19xf32>
    %c6 = arith.constant 6 : index
    %21 = memref.load %arg1[%c6] : memref<28xf32, #tpu.memory_space<smem>>
    %22 = vector.broadcast %21 : f32 to vector<1x17x19xf32>
    %23 = arith.mulf %12, %22 : vector<1x17x19xf32>
    %24 = arith.addf %3, %23 : vector<1x17x19xf32>
    %25 = vector.extract_strided_slice %11 {offsets = [0, 2, 0], sizes = [1, 17, 19], strides = [1, 1, 1]} : vector<1x21x19xf32> to vector<1x17x19xf32>
    %c5 = arith.constant 5 : index
    %26 = memref.load %arg1[%c5] : memref<28xf32, #tpu.memory_space<smem>>
    %27 = vector.broadcast %26 : f32 to vector<1x17x19xf32>
    %28 = arith.mulf %25, %27 : vector<1x17x19xf32>
    %29 = arith.addf %16, %28 : vector<1x17x19xf32>
    %c4 = arith.constant 4 : index
    %30 = memref.load %arg1[%c4] : memref<28xf32, #tpu.memory_space<smem>>
    %31 = vector.broadcast %30 : f32 to vector<1x17x19xf32>
    %32 = arith.mulf %25, %31 : vector<1x17x19xf32>
    %33 = arith.addf %20, %32 : vector<1x17x19xf32>
    %c3 = arith.constant 3 : index
    %34 = memref.load %arg1[%c3] : memref<28xf32, #tpu.memory_space<smem>>
    %35 = vector.broadcast %34 : f32 to vector<1x17x19xf32>
    %36 = arith.mulf %25, %35 : vector<1x17x19xf32>
    %37 = arith.addf %24, %36 : vector<1x17x19xf32>
    %38 = vector.extract_strided_slice %11 {offsets = [0, 4, 0], sizes = [1, 17, 19], strides = [1, 1, 1]} : vector<1x21x19xf32> to vector<1x17x19xf32>
    %c2 = arith.constant 2 : index
    %39 = memref.load %arg1[%c2] : memref<28xf32, #tpu.memory_space<smem>>
    %40 = vector.broadcast %39 : f32 to vector<1x17x19xf32>
    %41 = arith.mulf %38, %40 : vector<1x17x19xf32>
    %42 = arith.addf %29, %41 : vector<1x17x19xf32>
    %c1 = arith.constant 1 : index
    %43 = memref.load %arg1[%c1] : memref<28xf32, #tpu.memory_space<smem>>
    %44 = vector.broadcast %43 : f32 to vector<1x17x19xf32>
    %45 = arith.mulf %38, %44 : vector<1x17x19xf32>
    %46 = arith.addf %33, %45 : vector<1x17x19xf32>
    %c0_8 = arith.constant 0 : index
    %47 = memref.load %arg1[%c0_8] : memref<28xf32, #tpu.memory_space<smem>>
    %48 = vector.broadcast %47 : f32 to vector<1x17x19xf32>
    %49 = arith.mulf %38, %48 : vector<1x17x19xf32>
    %50 = arith.addf %37, %49 : vector<1x17x19xf32>
    %c0_9 = arith.constant 0 : index
    %c1_10 = arith.constant 1 : index
    %c0_11 = arith.constant 0 : index
    %c0_12 = arith.constant 0 : index
    %51 = vector.load %arg2[%c0_9, %c1_10, %c0_11, %c0_12] : memref<1x3x13x11xf32, #tpu.memory_space<vmem>>, vector<1x1x13x11xf32>
    %52 = vector.shape_cast %51 : vector<1x1x13x11xf32> to vector<1x13x11xf32>
    %53 = tpu.concatenate %4, %52, %5 in 1 : vector<1x3x11xf32>, vector<1x13x11xf32>, vector<1x5x11xf32> -> vector<1x21x11xf32>
    %54 = tpu.concatenate %6, %53, %7 in 2 : vector<1x21x3xf32>, vector<1x21x11xf32>, vector<1x21x5xf32> -> vector<1x21x19xf32>
    %55 = vector.extract_strided_slice %54 {offsets = [0, 0, 0], sizes = [1, 17, 19], strides = [1, 1, 1]} : vector<1x21x19xf32> to vector<1x17x19xf32>
    %c17 = arith.constant 17 : index
    %56 = memref.load %arg1[%c17] : memref<28xf32, #tpu.memory_space<smem>>
    %57 = vector.broadcast %56 : f32 to vector<1x17x19xf32>
    %58 = arith.mulf %55, %57 : vector<1x17x19xf32>
    %59 = arith.addf %42, %58 : vector<1x17x19xf32>
    %c16 = arith.constant 16 : index
    %60 = memref.load %arg1[%c16] : memref<28xf32, #tpu.memory_space<smem>>
    %61 = vector.broadcast %60 : f32 to vector<1x17x19xf32>
    %62 = arith.mulf %55, %61 : vector<1x17x19xf32>
    %63 = arith.addf %46, %62 : vector<1x17x19xf32>
    %c15 = arith.constant 15 : index
    %64 = memref.load %arg1[%c15] : memref<28xf32, #tpu.memory_space<smem>>
    %65 = vector.broadcast %64 : f32 to vector<1x17x19xf32>
    %66 = arith.mulf %55, %65 : vector<1x17x19xf32>
    %67 = arith.addf %50, %66 : vector<1x17x19xf32>
    %68 = vector.extract_strided_slice %54 {offsets = [0, 2, 0], sizes = [1, 17, 19], strides = [1, 1, 1]} : vector<1x21x19xf32> to vector<1x17x19xf32>
    %c14 = arith.constant 14 : index
    %69 = memref.load %arg1[%c14] : memref<28xf32, #tpu.memory_space<smem>>
    %70 = vector.broadcast %69 : f32 to vector<1x17x19xf32>
    %71 = arith.mulf %68, %70 : vector<1x17x19xf32>
    %72 = arith.addf %59, %71 : vector<1x17x19xf32>
    %c13 = arith.constant 13 : index
    %73 = memref.load %arg1[%c13] : memref<28xf32, #tpu.memory_space<smem>>
    %74 = vector.broadcast %73 : f32 to vector<1x17x19xf32>
    %75 = arith.mulf %68, %74 : vector<1x17x19xf32>
    %76 = arith.addf %63, %75 : vector<1x17x19xf32>
    %c12 = arith.constant 12 : index
    %77 = memref.load %arg1[%c12] : memref<28xf32, #tpu.memory_space<smem>>
    %78 = vector.broadcast %77 : f32 to vector<1x17x19xf32>
    %79 = arith.mulf %68, %78 : vector<1x17x19xf32>
    %80 = arith.addf %67, %79 : vector<1x17x19xf32>
    %81 = vector.extract_strided_slice %54 {offsets = [0, 4, 0], sizes = [1, 17, 19], strides = [1, 1, 1]} : vector<1x21x19xf32> to vector<1x17x19xf32>
    %c11 = arith.constant 11 : index
    %82 = memref.load %arg1[%c11] : memref<28xf32, #tpu.memory_space<smem>>
    %83 = vector.broadcast %82 : f32 to vector<1x17x19xf32>
    %84 = arith.mulf %81, %83 : vector<1x17x19xf32>
    %85 = arith.addf %72, %84 : vector<1x17x19xf32>
    %c10 = arith.constant 10 : index
    %86 = memref.load %arg1[%c10] : memref<28xf32, #tpu.memory_space<smem>>
    %87 = vector.broadcast %86 : f32 to vector<1x17x19xf32>
    %88 = arith.mulf %81, %87 : vector<1x17x19xf32>
    %89 = arith.addf %76, %88 : vector<1x17x19xf32>
    %c9 = arith.constant 9 : index
    %90 = memref.load %arg1[%c9] : memref<28xf32, #tpu.memory_space<smem>>
    %91 = vector.broadcast %90 : f32 to vector<1x17x19xf32>
    %92 = arith.mulf %81, %91 : vector<1x17x19xf32>
    %93 = arith.addf %80, %92 : vector<1x17x19xf32>
    %c0_13 = arith.constant 0 : index
    %c2_14 = arith.constant 2 : index
    %c0_15 = arith.constant 0 : index
    %c0_16 = arith.constant 0 : index
    %94 = vector.load %arg2[%c0_13, %c2_14, %c0_15, %c0_16] : memref<1x3x13x11xf32, #tpu.memory_space<vmem>>, vector<1x1x13x11xf32>
    %95 = vector.shape_cast %94 : vector<1x1x13x11xf32> to vector<1x13x11xf32>
    %96 = tpu.concatenate %4, %95, %5 in 1 : vector<1x3x11xf32>, vector<1x13x11xf32>, vector<1x5x11xf32> -> vector<1x21x11xf32>
    %97 = tpu.concatenate %6, %96, %7 in 2 : vector<1x21x3xf32>, vector<1x21x11xf32>, vector<1x21x5xf32> -> vector<1x21x19xf32>
    %98 = vector.extract_strided_slice %97 {offsets = [0, 0, 0], sizes = [1, 17, 19], strides = [1, 1, 1]} : vector<1x21x19xf32> to vector<1x17x19xf32>
    %c26 = arith.constant 26 : index
    %99 = memref.load %arg1[%c26] : memref<28xf32, #tpu.memory_space<smem>>
    %100 = vector.broadcast %99 : f32 to vector<1x17x19xf32>
    %101 = arith.mulf %98, %100 : vector<1x17x19xf32>
    %102 = arith.addf %85, %101 : vector<1x17x19xf32>
    %c25 = arith.constant 25 : index
    %103 = memref.load %arg1[%c25] : memref<28xf32, #tpu.memory_space<smem>>
    %104 = vector.broadcast %103 : f32 to vector<1x17x19xf32>
    %105 = arith.mulf %98, %104 : vector<1x17x19xf32>
    %106 = arith.addf %89, %105 : vector<1x17x19xf32>
    %c24 = arith.constant 24 : index
    %107 = memref.load %arg1[%c24] : memref<28xf32, #tpu.memory_space<smem>>
    %108 = vector.broadcast %107 : f32 to vector<1x17x19xf32>
    %109 = arith.mulf %98, %108 : vector<1x17x19xf32>
    %110 = arith.addf %93, %109 : vector<1x17x19xf32>
    %111 = vector.extract_strided_slice %97 {offsets = [0, 2, 0], sizes = [1, 17, 19], strides = [1, 1, 1]} : vector<1x21x19xf32> to vector<1x17x19xf32>
    %c23 = arith.constant 23 : index
    %112 = memref.load %arg1[%c23] : memref<28xf32, #tpu.memory_space<smem>>
    %113 = vector.broadcast %112 : f32 to vector<1x17x19xf32>
    %114 = arith.mulf %111, %113 : vector<1x17x19xf32>
    %115 = arith.addf %102, %114 : vector<1x17x19xf32>
    %c22 = arith.constant 22 : index
    %116 = memref.load %arg1[%c22] : memref<28xf32, #tpu.memory_space<smem>>
    %117 = vector.broadcast %116 : f32 to vector<1x17x19xf32>
    %118 = arith.mulf %111, %117 : vector<1x17x19xf32>
    %119 = arith.addf %106, %118 : vector<1x17x19xf32>
    %c21 = arith.constant 21 : index
    %120 = memref.load %arg1[%c21] : memref<28xf32, #tpu.memory_space<smem>>
    %121 = vector.broadcast %120 : f32 to vector<1x17x19xf32>
    %122 = arith.mulf %111, %121 : vector<1x17x19xf32>
    %123 = arith.addf %110, %122 : vector<1x17x19xf32>
    %124 = vector.extract_strided_slice %97 {offsets = [0, 4, 0], sizes = [1, 17, 19], strides = [1, 1, 1]} : vector<1x21x19xf32> to vector<1x17x19xf32>
    %c20 = arith.constant 20 : index
    %125 = memref.load %arg1[%c20] : memref<28xf32, #tpu.memory_space<smem>>
    %126 = vector.broadcast %125 : f32 to vector<1x17x19xf32>
    %127 = arith.mulf %124, %126 : vector<1x17x19xf32>
    %128 = arith.addf %115, %127 : vector<1x17x19xf32>
    %c19 = arith.constant 19 : index
    %129 = memref.load %arg1[%c19] : memref<28xf32, #tpu.memory_space<smem>>
    %130 = vector.broadcast %129 : f32 to vector<1x17x19xf32>
    %131 = arith.mulf %124, %130 : vector<1x17x19xf32>
    %132 = arith.addf %119, %131 : vector<1x17x19xf32>
    %c18 = arith.constant 18 : index
    %133 = memref.load %arg1[%c18] : memref<28xf32, #tpu.memory_space<smem>>
    %134 = vector.broadcast %133 : f32 to vector<1x17x19xf32>
    %135 = arith.mulf %124, %134 : vector<1x17x19xf32>
    %136 = arith.addf %123, %135 : vector<1x17x19xf32>
    %137 = vector.extract_strided_slice %128 {offsets = [0, 0, 0], sizes = [1, 17, 15], strides = [1, 1, 1]} : vector<1x17x19xf32> to vector<1x17x15xf32>
    %138 = vector.extract_strided_slice %132 {offsets = [0, 0, 2], sizes = [1, 17, 15], strides = [1, 1, 1]} : vector<1x17x19xf32> to vector<1x17x15xf32>
    %139 = arith.addf %137, %138 : vector<1x17x15xf32>
    %140 = vector.extract_strided_slice %136 {offsets = [0, 0, 4], sizes = [1, 17, 15], strides = [1, 1, 1]} : vector<1x17x19xf32> to vector<1x17x15xf32>
    %141 = arith.addf %139, %140 : vector<1x17x15xf32>
    %cst_17 = arith.constant 0.000000e+00 : f32
    %142 = vector.broadcast %cst_17 : f32 to vector<1x17x15xf32>
    %143 = arith.cmpf ogt, %141, %142 : vector<1x17x15xf32>
    %144 = arith.negf %141 : vector<1x17x15xf32>
    %145 = math.exp %144 : vector<1x17x15xf32>
    %cst_18 = arith.constant 1.000000e+00 : f32
    %146 = vector.broadcast %cst_18 : f32 to vector<1x17x15xf32>
    %147 = arith.addf %146, %145 : vector<1x17x15xf32>
    %148 = arith.divf %146, %147 : vector<1x17x15xf32>
    %149 = arith.select %143, %141, %148 : vector<1x17x15xi1>, vector<1x17x15xf32>
    %c0_19 = arith.constant 0 : index
    %c0_20 = arith.constant 0 : index
    %c0_21 = arith.constant 0 : index
    %c0_22 = arith.constant 0 : index
    %150 = vector.load %arg3[%c0_19, %c0_20, %c0_21, %c0_22] : memref<1x1x17x15xf32, #tpu.memory_space<vmem>>, vector<1x1x17x15xf32>
    %151 = vector.shape_cast %150 : vector<1x1x17x15xf32> to vector<1x17x15xf32>
    %152 = vector.shape_cast %149 : vector<1x17x15xf32> to vector<1x1x17x15xf32>
    tpu.vector_store %arg3[%c0_19, %c0_20, %c0_21, %c0_22], %152 {strides = array<i32>} : memref<1x1x17x15xf32, #tpu.memory_space<vmem>>, vector<1x1x17x15xf32>,
    return
  }
  func.func @transform_0(%arg0: i32) -> i32 {
    %c0_i32 = arith.constant 0 : i32
    %c0_i32_0 = arith.constant 0 : i32
    return %c0_i32 : i32
  }
  func.func @transform_1(%arg0: i32) -> (i32, i32, i32, i32) {
    %c0_i32 = arith.constant 0 : i32
    %c0_i32_0 = arith.constant 0 : i32
    %c0_i32_1 = arith.constant 0 : i32
    %c0_i32_2 = arith.constant 0 : i32
    return %arg0, %c0_i32, %c0_i32_0, %c0_i32_1 : i32, i32, i32, i32
  }
  func.func @transform_2(%arg0: i32) -> (i32, i32, i32, i32) {
    %c0_i32 = arith.constant 0 : i32
    %c0_i32_0 = arith.constant 0 : i32
    %c0_i32_1 = arith.constant 0 : i32
    %c0_i32_2 = arith.constant 0 : i32
    return %arg0, %c0_i32, %c0_i32_0, %c0_i32_1 : i32, i32, i32, i32
  }
}

</mosaic_0001>

<bundles_post_ra>
// kernel: tpu_custom_call.1
= control target key start
LH: loop header
LB: loop body
LE: loop exit
PB: predicated region body
PF: predicated region fallthrough
CT: control target
= control target key end

     0   :  { %7 = vsyncpa [#allocation3], 0  ;;  %s902_s9 = smov 0   ;;  %s1390_s0 = inlined_call_operand.vmem [shape: f32[28], index: 0, kind: input, shape index: {}]   ;;  %s1391_s1 = inlined_call_operand.vmem [shape: f32[2,3,13,11], index: 1, kind: input, shape index: {}]   ;;  %s1392_s2 = inlined_call_operand.vmem [shape: f32[2,1,17,15], index: 2, kind: output, shape index: {}]  }
   0x1 LB: > { %s773_s10 = sadd.s32 4294967295, %s880_s9   ;;  %p775_p0 = scmp.ge.s32.totalorder %s880_s9, 1  ;;  %s880_s9 = sphi %s902_s9, %s13_s9  }
   0x2   : > { %p91_p1 = scmp.lt.s32.totalorder %s880_s9, 3  ;;  %s104_s13 = sshll.u32 %s1390_s0, 4  ;;  %s105_s13 = int_to_ptr.vmem [resolvable:$true] %s104_s13 }
   0x3   : > { %p828_p3 = scmp.eq.s32.totalorder %s773_s10, 0  ;;  %s855_s15 = scalar_lea.vmem %s105_s13, 16 }
   0x4   : > { %p913_p2 = pnand %p775_p0, %p91_p1  ;;  %p856_p6 = scmp.ne.s32.totalorder %s105_s13, %s855_s15 }
   0x5   : > { %p863_p10 = scmp.lt.s32.totalorder %s105_s13, %s105_s13  ;;  %p864_p11 = scmp.lt.s32.totalorder %s855_s15, %s855_s15 }
   0x6   : > { %p824_p4 = pneg %p913_p2 }
   0x7   : > { %p865_p12 = por %p864_p11, %p863_p10 }
   0x8   : > { %p825_p5 = pnand %p828_p3, %p824_p4 }
   0xa   : > { %p857_p7 = pneg %p825_p5 }
   0xc   : > { %p858_p8 = pnand %p857_p7, %p856_p6 }
   0xe   : > { %p859_p9 = pneg %p858_p8 }
  0x10   : > { %p866_p13 = pnand %p865_p12, %p859_p9 }
  0x12   : > { %869 = shalt.err (!%p866_p13)
}
  0x13   : > { %s882_s16 = smov [#allocation2]   ;;  %125 = sbr.rel (%p913_p2) target bundleno = 348 (0x15c), region = 28 }
  0x14   : > { %827 = dma.vmem_to_smem (!%p825_p5), %s105_s13, 16, %s882_s16, [#allocation3]  }
  0x1a   : > { %875 = dma.done.wait (%p828_p3), [#allocation3], 16  }
  0x1b   : > { %877 = vsyncadd (%p828_p3), [#allocation3], 4294967280 }
  0x1c   : > { %131 = sfence }
  0x1d   : > { %p148_p0 = scmp.lt.s32.totalorder %s773_s10, 1  ;;  %v883_v0 = vmov 0.0   ;;  %s884_s17 = smov 3   ;;  %vm164_vm0 = vcmask 1042432   ;;  %vm181_vm1 = vcmask 23552   ;;  %vm185_vm2 = vcmask 113664  }
  0x1e   : > { %176 = vrot.lane.b32.xlu1 %v883_v0, %s884_s17  ;;  %s787_s22 = sld [smem:[#allocation2 + $0x4]]  ;;  %s788_s23 = sld [smem:[#allocation2 + $0x3]]  ;;  %vm221_vm3 = vcmask 1045504   ;;  %vm279_vm4 = vcmask 1043456   ;;  %vm701_vm5 = vcmask 121856   ;;  %vm704_vm8 = vcmask 114688  }
  0x1f   : > { %s1414_s10 = smov (!%p148_p0, %s773_s10), 1  ;;  %s310_s24 = sld [smem:[#allocation2]] }
  0x20   : > { %s818_s18 = smul.u32 48, %s1414_s10  ;;  %s784_s25 = sld [smem:[#allocation2 + $0x7]] }
  0x21   : > { %s790_s26 = sld [smem:[#allocation2 + $0x1]]  ;;  %s794_s27 = sld [smem:[#allocation2 + $0x10]] }
  0x22   : > { %s152_s21 = scalar_lea.vmem %s1391_s1, %s818_s18  ;;  %s797_s28 = sld [smem:[#allocation2 + $0xd]] }
  0x23   : > { %v160_v1 = vld [vmem:[%s152_s21] sm:$0xff]  ;;  %v161_v2 = vld [vmem:[%s152_s21 + $0x8] sm:$0x1f]  ;;  %v791_v3 = vld [vmem:[%s152_s21 + $0x10] sm:$0xff]  ;;  %s800_s29 = sld [smem:[#allocation2 + $0xa]]  ;;  %s805_s30 = sld [smem:[#allocation2 + $0x19]] }
  0x24   : > { %v165_v4 = vrot.slane %v160_v1, 5  ;;  %v166_v5 = vrot.slane %v161_v2, 5  ;;  %v334_v6 = vrot.slane %v791_v3, 5  ;;  %v802_v7 = vld [vmem:[%s152_s21 + $0x20] sm:$0xff]  ;;  %v792_v8 = vld [vmem:[%s152_s21 + $0x18] sm:$0x1f]  ;;  %v940_v19 = vstv %s787_s22 }
  0x25   : > { %v493_v11 = vrot.slane %v802_v7, 5  ;;  %v335_v13 = vrot.slane %v792_v8, 5  ;;  %v803_v15 = vld [vmem:[%s152_s21 + $0x28] sm:$0x1f]  ;;  %s808_s3 = sld [smem:[#allocation2 + $0x16]]  ;;  %s811_s4 = sld [smem:[#allocation2 + $0x13]]  ;;  %v946_v20 = vstv %s788_s23  ;;  %v948_v21 = vstv %s310_s24 }
  0x26   : > { %v169_v9 = vsel %vm164_vm0, 0.0, %v165_v4  ;;  %v338_v10 = vsel %vm164_vm0, 0.0, %v334_v6  ;;  %v167_v12 = vsel %vm164_vm0, %v165_v4, %v166_v5  ;;  %v494_v17 = vrot.slane %v803_v15, 5  ;;  %s785_s5 = sld [smem:[#allocation2 + $0x6]]  ;;  %s795_s6 = sld [smem:[#allocation2 + $0xf]] }
  0x27   : > { %172 = vrot.lane.b32.xlu0 %v169_v9, %s884_s17  ;;  %340 = vrot.lane.b32.xlu1 %v338_v10, %s884_s17  ;;  %v497_v14 = vsel %vm164_vm0, 0.0, %v493_v11  ;;  %v336_v16 = vsel %vm164_vm0, %v334_v6, %v335_v13  ;;  %s798_s7 = sld [smem:[#allocation2 + $0xc]]  ;;  %s801_s8 = sld [smem:[#allocation2 + $0x9]]  ;;  %v950_v22 = vstv %s784_s25  ;;  %v952_v23 = vstv %s790_s26 }
  0x28   : > { %v495_v18 = vsel %vm164_vm0, %v493_v11, %v494_v17  ;;  %s806_s11 = sld [smem:[#allocation2 + $0x18]]  ;;  %s936_s12 = sld [smem:[#allocation2 + $0x15]]  ;;  %v958_v25 = vstv %s794_s27  ;;  %v960_v26 = vstv %s797_s28 }
  0x29   : > { %s938_s13 = sld [smem:[#allocation2 + $0x12]]  ;;  %s942_s14 = sld [smem:[#allocation2 + $0x1b]]  ;;  %v962_v27 = vstv %s800_s29  ;;  %v964_v28 = vstv %s805_s30 }
  0x2a   : > { %s944_s15 = sld [smem:[#allocation2 + $0x8]]  ;;  %s954_s16 = sld [smem:[#allocation2 + $0x5]] }
  0x2b   : > { %174 = vrot.lane.b32.xlu0 %v167_v12, %s884_s17  ;;  %499 = vrot.lane.b32.xlu1 %v497_v14, %s884_s17  ;;  %v967_v30 = vstv %s808_s3  ;;  %v969_v31 = vstv %s811_s4  ;;  %s885_s18 = smov 126   ;;  %s1220_s19 = sld [smem:[#allocation2 + $0xe]] }
  0x2c   : > { %v971_v32 = vstv %s785_s5  ;;  %v976_v34 = vstv %s795_s6  ;;  %s1237_s20 = sld [smem:[#allocation2 + $0xb]]  ;;  %s1243_s21 = sld [smem:[#allocation2 + $0x11]] }
  0x2d   : > { %v978_v35 = vstv %s798_s7  ;;  %v980_v36 = vstv %s801_s8  ;;  %s1245_s22 = sld [smem:[#allocation2 + $0x1a]]  ;;  %s1249_s23 = sld [smem:[#allocation2 + $0x17]] }
  0x2e   : > { %v992_v40 = vstv %s806_s11  ;;  %v1003_v43 = vstv %s936_s12  ;;  %s1251_s24 = sld [smem:[#allocation2 + $0x14]]  ;;  %s886_s25 = smov 124  }
  0x2f   : > { %342 = vrot.lane.b32.xlu0 %v336_v16, %s884_s17  ;;  %v1006_v44 = vstv %s938_s13  ;;  %v1027_v51 = vstv %s942_s14  ;;  %s819_s26 = smul.u32 24, %s1414_s10 }
  0x30   : > { %v1030_v52 = vstv %s944_s15  ;;  %v1037_v55 = vstv %s954_s16 }
  0x31   : > { %s157_s29 = scalar_lea.vmem %s1392_s2, %s819_s26 }
  0x33   : > { %501 = vrot.lane.b32.xlu0 %v495_v18, %s884_s17  ;;  %s956_s17 = sld [smem:[#allocation2 + $0x2]] }
  0x39   : > { %v1040_v56 = vstv %s956_s17 }
  0x90   : > { %v177_v24 = vpop.permute.xlu1 %176 }
  0x91   : > { %v184_v29 = vsel %vm181_vm1, 0.0, %v177_v24 }
  0x92   : > { %v974_v33 = vsel %vm185_vm2, %v184_v29, 0.0 }
  0x93   : > { %v201_v37 = vmul.f32 %v950_v22, %v974_v33  ;;  %v986_v38 = vmul.f32 %v940_v19, %v974_v33  ;;  %v990_v39 = vmul.f32 %v952_v23, %v974_v33  ;;  %v996_v41 = vmul.f32 %v960_v26, %v974_v33 }
  0x94   : > { %v1000_v42 = vmul.f32 %v962_v27, %v974_v33  ;;  %v1012_v47 = vmul.f32 %v967_v30, %v974_v33  ;;  %v1016_v48 = vmul.f32 %v969_v31, %v974_v33  ;;  %v1020_v49 = vmul.f32 %v946_v20, %v974_v33 }
  0x95   : > { %v244_v45 = vrot.slane %v986_v38, 2  ;;  %v302_v46 = vrot.slane %v990_v39, 4  ;;  %v1024_v50 = vmul.f32 %v948_v21, %v974_v33  ;;  %v362_v54 = vmul.f32 %v958_v25, %v974_v33 }
  0x96   : > { %v1395_v57 = vrot.slane %v996_v41, 2  ;;  %v1394_v58 = vrot.slane %v1000_v42, 4  ;;  %v521_v59 = vmul.f32 %v964_v28, %v974_v33  ;;  %v1048_v60 = vmul.f32 %v978_v35, %v974_v33 }
  0x97   : > { %v251_v53 = vadd.f32 %v244_v45, %v201_v37  ;;  %v1396_v62 = vrot.slane %v1012_v47, 2  ;;  %v1397_v63 = vrot.slane %v1016_v48, 4  ;;  %v1056_v0 = vmul.f32 %v980_v36, %v974_v33 }
  0x98   : > { %v1393_v3 = vrot.slane %v1020_v49, 2  ;;  %v1062_v5 = vmul.f32 %v1003_v43, %v974_v33  ;;  %v209_v6 = vmul.f32 %v971_v32, %v974_v33  ;;  %v1070_v10 = vmul.f32 %v1006_v44, %v974_v33 }
  0x99   : > { %v309_v61 = vadd.f32 %v302_v46, %v251_v53  ;;  %v173_v1 = vpop.permute.xlu0 %172  ;;  %v341_v2 = vpop.permute.xlu1 %340  ;;  %v1081_v14 = vmul.f32 %v976_v34, %v974_v33 }
  0x9a   : > { %v182_v7 = vsel %vm181_vm1, 0.0, %v173_v1  ;;  %v346_v8 = vsel %vm181_vm1, 0.0, %v341_v2 }
  0x9b   : > { %v365_v9 = vadd.f32 %v362_v54, %v309_v61  ;;  %v1073_v11 = vsel %vm185_vm2, %v182_v7, 0.0  ;;  %v1076_v12 = vsel %vm185_vm2, %v346_v8, 0.0  ;;  %v1099_v61 = vadd.f32 %v1393_v3, %v209_v6 }
  0x9c   : > { %v235_v15 = vmul.f32 %v940_v19, %v1073_v11  ;;  %v1087_v16 = vmul.f32 %v946_v20, %v1073_v11  ;;  %v293_v37 = vmul.f32 %v952_v23, %v1073_v11  ;;  %v395_v53 = vmul.f32 %v960_v26, %v1076_v12 }
  0x9d   : > { %v411_v17 = vadd.f32 %v1395_v57, %v365_v9  ;;  %v175_v24 = vpop.permute.xlu0 %174  ;;  %v500_v29 = vpop.permute.xlu1 %499  ;;  %v1103_v1 = vmul.f32 %v948_v21, %v1073_v11  ;;  %v199_v8 = vmul.f32 %v950_v22, %v1073_v11  ;;  %v360_v6 = vmul.f32 %v958_v25, %v1076_v12 }
  0x9e   : > { %v183_v2 = vsel %vm181_vm1, 0.0, %v175_v24  ;;  %v241_v9 = vrot.slane %v235_v15, 2  ;;  %v505_v54 = vsel %vm181_vm1, 0.0, %v500_v29  ;;  %v299_v3 = vrot.slane %v293_v37, 4 }
  0x9f   : > { %v468_v7 = vadd.f32 %v1394_v58, %v411_v17  ;;  %v1111_v18 = vsel %vm185_vm2, %v183_v2, 0.0  ;;  %v401_v58 = vrot.slane %v395_v53, 2  ;;  %v452_v29 = vmul.f32 %v962_v27, %v1076_v12 }
  0xa0   : > { %v236_v24 = vmul.f32 %v940_v19, %v1111_v18  ;;  %v1121_v17 = vmul.f32 %v946_v20, %v1111_v18  ;;  %v294_v2 = vmul.f32 %v952_v23, %v1111_v18  ;;  %v1135_v20 = vmul.f32 %v948_v21, %v1111_v18 }
  0xa1   : > { %v524_v4 = vadd.f32 %v521_v59, %v468_v7  ;;  %v343_v15 = vpop.permute.xlu0 %342  ;;  %v1131_v59 = vsel %vm185_vm2, %v505_v54, 0.0  ;;  %v200_v53 = vmul.f32 %v950_v22, %v1111_v18  ;;  %v208_v39 = vmul.f32 %v971_v32, %v1111_v18 }
  0xa2   : > { %v242_v57 = vrot.slane %v236_v24, 2  ;;  %v347_v13 = vsel %vm181_vm1, 0.0, %v343_v15  ;;  %v300_v23 = vrot.slane %v294_v2, 4  ;;  %v554_v2 = vmul.f32 %v967_v30, %v1131_v59 }
  0xa3   : > { %v570_v19 = vadd.f32 %v1396_v62, %v524_v4  ;;  %v1138_v37 = vsel %vm185_vm2, %v347_v13, 0.0  ;;  %v458_v62 = vrot.slane %v452_v29, 4  ;;  %v519_v38 = vmul.f32 %v964_v28, %v1131_v59 }
  0xa4   : > { %v243_v24 = vsel %vm221_vm3, %v241_v9, %v242_v57  ;;  %v396_v4 = vmul.f32 %v960_v26, %v1138_v37  ;;  %v453_v54 = vmul.f32 %v962_v27, %v1138_v37  ;;  %v301_v13 = vsel %vm279_vm4, %v299_v3, %v300_v23 }
  0xa5   : > { %v627_v7 = vadd.f32 %v1397_v63, %v570_v19  ;;  %v502_v21 = vpop.permute.xlu0 %501  ;;  %v249_v15 = vadd.f32 %v243_v24, %v199_v8  ;;  %v611_v26 = vmul.f32 %v969_v31, %v1131_v59  ;;  %v245_v27 = vsel %vm221_vm3, %v242_v57, %v244_v45 }
  0xa6   : > { %v506_v22 = vsel %vm181_vm1, 0.0, %v502_v21  ;;  %v402_v9 = vrot.slane %v396_v4, 2  ;;  %v261_v8 = vrot.slane %v1121_v17, 2  ;;  %v459_v19 = vrot.slane %v453_v54, 4 }
  0xa7   : > { %654 = vrot.lane.b32.xlu1 %v627_v7, %s885_s18  ;;  %v1161_v3 = vsel %vm185_vm2, %v506_v22, 0.0  ;;  %v307_v29 = vadd.f32 %v301_v13, %v249_v15  ;;  %v560_v4 = vrot.slane %v554_v2, 2  ;;  %v250_v45 = vadd.f32 %v245_v27, %v200_v53 }
  0xa8   : > { %v403_v24 = vsel %vm221_vm3, %v401_v58, %v402_v9  ;;  %v555_v7 = vmul.f32 %v967_v30, %v1161_v3  ;;  %v612_v21 = vmul.f32 %v969_v31, %v1161_v3  ;;  %v361_v57 = vmul.f32 %v958_v25, %v1138_v37 }
  0xa9   : > { %v363_v63 = vadd.f32 %v360_v6, %v307_v29  ;;  %v460_v17 = vsel %vm279_vm4, %v458_v62, %v459_v19  ;;  %v617_v15 = vrot.slane %v611_v26, 4  ;;  %v303_v30 = vsel %vm279_vm4, %v300_v23, %v302_v46 }
  0xaa   : > { %v561_v54 = vrot.slane %v555_v7, 2  ;;  %v618_v13 = vrot.slane %v612_v21, 4  ;;  %v308_v2 = vadd.f32 %v303_v30, %v250_v45  ;;  %v1399_v31 = vrot.slane %v996_v41, 2 }
  0xab   : > { %v409_v58 = vadd.f32 %v403_v24, %v363_v63  ;;  %v1400_v22 = vrot.slane %v1000_v42, 4  ;;  %v520_v62 = vmul.f32 %v964_v28, %v1161_v3  ;;  %v1401_v23 = vrot.slane %v1020_v49, 2 }
  0xac   : > { %v405_v6 = vsel %vm221_vm3, %v402_v9, %v1399_v31  ;;  %v562_v53 = vsel %vm221_vm3, %v560_v4, %v561_v54  ;;  %v364_v63 = vadd.f32 %v361_v57, %v308_v2  ;;  %v319_v9 = vrot.slane %v1135_v20, 4 }
  0xad   : > { %v462_v25 = vsel %vm279_vm4, %v459_v19, %v1400_v22  ;;  %v466_v46 = vadd.f32 %v460_v17, %v409_v58  ;;  %v264_v41 = vsel %vm221_vm3, %v261_v8, %v1401_v23  ;;  %v369_v42 = vmul.f32 %v976_v34, %v1138_v37 }
  0xae   : > { %v269_v26 = vadd.f32 %v264_v41, %v208_v39  ;;  %v415_v27 = vmul.f32 %v978_v35, %v1138_v37  ;;  %v1197_v28 = vmul.f32 %v980_v36, %v1138_v37  ;;  %v619_v19 = vsel %vm279_vm4, %v617_v15, %v618_v13 }
  0xaf   : > { %v522_v29 = vadd.f32 %v519_v38, %v466_v46  ;;  %v410_v24 = vadd.f32 %v405_v6, %v364_v63  ;;  %v1402_v49 = vrot.slane %v1024_v50, 4  ;;  %v1403_v20 = vrot.slane %v1012_v47, 2 }
  0xb0   : > { %v421_v45 = vrot.slane %v415_v27, 2  ;;  %v478_v57 = vrot.slane %v1197_v28, 4  ;;  %v1404_v58 = vrot.slane %v1016_v48, 4  ;;  %v574_v15 = vmul.f32 %v1003_v43, %v1161_v3 }
  0xb1   : > { %v322_v7 = vsel %vm279_vm4, %v319_v9, %v1402_v49  ;;  %v564_v4 = vsel %vm221_vm3, %v561_v54, %v1403_v20  ;;  %v568_v17 = vadd.f32 %v562_v53, %v522_v29  ;;  %v467_v30 = vadd.f32 %v462_v25, %v410_v24 }
  0xb2   : > { %v327_v21 = vadd.f32 %v322_v7, %v269_v26  ;;  %v621_v38 = vsel %vm279_vm4, %v618_v13, %v1404_v58  ;;  %v528_v31 = vmul.f32 %v992_v40, %v1161_v3  ;;  %v1216_v47 = vmul.f32 %v1006_v44, %v1161_v3 }
  0xb3   : > { %v207_v54 = vmul.f32 %v971_v32, %v1073_v11  ;;  %v625_v6 = vadd.f32 %v619_v19, %v568_v17  ;;  %v523_v48 = vadd.f32 %v520_v62, %v467_v30  ;;  %v1405_v13 = vrot.slane %v1048_v60, 2 }
  0xb4   : > { %v372_v2 = vadd.f32 %v369_v42, %v327_v21  ;;  %v1406_v22 = vrot.slane %v1087_v16, 2  ;;  %v1407_v46 = vrot.slane %v1056_v0, 4  ;;  %v318_v32 = vrot.slane %v1103_v1, 4 }
  0xb5   : > { %v424_v53 = vsel %vm221_vm3, %v421_v45, %v1405_v13  ;;  %650 = vrot.lane.b32.xlu1 %v625_v6, %s885_s18  ;;  %v569_v41 = vadd.f32 %v564_v4, %v523_v48  ;;  %v580_v62 = vrot.slane %v574_v15, 2  ;;  %v368_v26 = vmul.f32 %v976_v34, %v1076_v12 }
  0xb6   : > { %v262_v25 = vsel %vm221_vm3, %v1406_v22, %v261_v8  ;;  %v429_v39 = vadd.f32 %v424_v53, %v372_v2  ;;  %v481_v63 = vsel %vm279_vm4, %v478_v57, %v1407_v46  ;;  %v414_v16 = vmul.f32 %v978_v35, %v1076_v12 }
  0xb7   : > { %v268_v23 = vadd.f32 %v262_v25, %v207_v54  ;;  %v637_v42 = vrot.slane %v1216_v47, 4  ;;  %v320_v27 = vsel %vm279_vm4, %v318_v32, %v319_v9  ;;  %v471_v1 = vmul.f32 %v980_v36, %v1076_v12 }
  0xb8   : > { %v486_v8 = vadd.f32 %v481_v63, %v429_v39  ;;  %v626_v28 = vadd.f32 %v621_v38, %v569_v41  ;;  %v420_v34 = vrot.slane %v414_v16, 2  ;;  %v573_v35 = vmul.f32 %v1003_v43, %v1131_v59 }
  0xb9   : > { %v326_v29 = vadd.f32 %v320_v27, %v268_v23  ;;  %v639_v9 = vrot.slane %v1070_v10, 4  ;;  %v477_v24 = vrot.slane %v471_v1, 4  ;;  %v1408_v36 = vmov %v1402_v49 }
  0xba   : > { %v531_v19 = vadd.f32 %v528_v31, %v486_v8  ;;  %v328_v49 = vadd.f32 %v1408_v36, %v1099_v61  ;;  %652 = vrot.lane.b32.xlu0 %v626_v28, %s885_s18  ;;  %v1409_v7 = vrot.slane %v1062_v5, 2  ;;  %v422_v43 = vsel %vm221_vm3, %v420_v34, %v421_v45 }
  0xbb   : > { %v371_v4 = vadd.f32 %v368_v26, %v326_v29  ;;  %v630_v21 = vmul.f32 %v1006_v44, %v1131_v59  ;;  %v579_v10 = vrot.slane %v573_v35, 2  ;;  %v375_v58 = vstv %s1220_s19 }
  0xbc   : > { %v583_v20 = vsel %vm221_vm3, %v580_v62, %v1409_v7  ;;  %v373_v30 = vadd.f32 %v1081_v14, %v328_v49  ;;  %v640_v50 = vsel %vm279_vm4, %v637_v42, %v639_v9  ;;  %v527_v38 = vmul.f32 %v992_v40, %v1131_v59 }
  0xbd   : > { %v588_v17 = vadd.f32 %v583_v20, %v531_v19  ;;  %v428_v61 = vadd.f32 %v422_v43, %v371_v4  ;;  %v529_v45 = vmul.f32 %v992_v40, %v974_v33  ;;  %v479_v44 = vsel %vm279_vm4, %v477_v24, %v478_v57 }
  0xbe   : > { %v1410_v2 = vmov %v1405_v13  ;;  %v1276_v31 = vmul.f32 %v1037_v55, %v974_v33  ;;  %v636_v54 = vrot.slane %v630_v21, 4  ;;  %v1280_v6 = vmul.f32 %v1040_v56, %v974_v33 }
  0xbf   : > { %v645_v15 = vadd.f32 %v640_v50, %v588_v17  ;;  %v430_v14 = vadd.f32 %v1410_v2, %v373_v30  ;;  %v485_v47 = vadd.f32 %v479_v44, %v428_v61  ;;  %v432_v48 = vstv %s1237_s20 }
  0xc0   : > { %v581_v40 = vsel %vm221_vm3, %v579_v10, %v580_v62  ;;  %v1411_v60 = vmov %v1407_v46  ;;  %v1288_v13 = vstv %s1243_s21  ;;  %v1291_v53 = vstv %s1245_s22 }
  0xc1   : > { %667 = vrot.lane.b32.xlu1 %v645_v15, %s886_s25  ;;  %v487_v57 = vadd.f32 %v1411_v60, %v430_v14  ;;  %v530_v22 = vadd.f32 %v527_v38, %v485_v47  ;;  %v1294_v25 = vmul.f32 %v375_v58, %v974_v33  ;;  %v534_v39 = vstv %s1249_s23 }
  0xc2   : > { %v591_v46 = vstv %s1251_s24  ;;  %v225_v23 = vrot.slane %v1276_v31, 2  ;;  %v1300_v32 = vmul.f32 %v432_v48, %v974_v33  ;;  %v191_v0 = vmul.f32 %v1030_v52, %v1073_v11 }
  0xc3   : > { %v532_v63 = vadd.f32 %v529_v45, %v487_v57  ;;  %v587_v41 = vadd.f32 %v581_v40, %v530_v22  ;;  %v638_v62 = vsel %vm279_vm4, %v636_v54, %v637_v42  ;;  %v283_v26 = vrot.slane %v1280_v6, 4 }
  0xc4   : > { %v215_v16 = vmul.f32 %v1037_v55, %v1073_v11  ;;  %v1412_v8 = vmov %v1409_v7  ;;  %v1311_v1 = vmul.f32 %v534_v39, %v974_v33  ;;  %v216_v28 = vmul.f32 %v1037_v55, %v1111_v18 }
  0xc5   : > { %v589_v27 = vadd.f32 %v1412_v8, %v532_v63  ;;  %v273_v29 = vmul.f32 %v1040_v56, %v1073_v11  ;;  %v644_v34 = vadd.f32 %v638_v62, %v587_v41  ;;  %v385_v42 = vrot.slane %v1294_v25, 2 }
  0xc6   : > { %v1319_v35 = vmul.f32 %v591_v46, %v974_v33  ;;  %v274_v19 = vmul.f32 %v1040_v56, %v1111_v18  ;;  %v442_v5 = vrot.slane %v1300_v32, 4  ;;  %v194_v24 = vadd.f32 %v191_v0, %v1027_v51 }
  0xc7   : > { %v222_v36 = vrot.slane %v215_v16, 2  ;;  %v223_v49 = vrot.slane %v216_v28, 2  ;;  %665 = vrot.lane.b32.xlu0 %v644_v34, %s886_s25  ;;  %v280_v55 = vrot.slane %v273_v29, 4  ;;  %v376_v11 = vmul.f32 %v375_v58, %v1076_v12 }
  0xc8   : > { %v281_v7 = vrot.slane %v274_v19, 4  ;;  %v377_v20 = vmul.f32 %v375_v58, %v1138_v37  ;;  %v646_v4 = vadd.f32 %v639_v9, %v589_v27  ;;  %v433_v21 = vmul.f32 %v432_v48, %v1076_v12 }
  0xc9   : > { %v224_v43 = vsel %vm221_vm3, %v222_v36, %v223_v49  ;;  %v434_v56 = vmul.f32 %v432_v48, %v1138_v37  ;;  %v352_v30 = vmul.f32 %v1288_v13, %v1076_v12  ;;  %v382_v50 = vrot.slane %v376_v11, 2 }
  0xca   : > { %v230_v17 = vadd.f32 %v224_v43, %v194_v24  ;;  %v282_v10 = vsel %vm279_vm4, %v280_v55, %v281_v7  ;;  %v383_v61 = vrot.slane %v377_v20, 2  ;;  %v439_v38 = vrot.slane %v433_v21, 4 }
  0xcb   : > { %v440_v45 = vrot.slane %v434_v56, 4  ;;  %v535_v15 = vmul.f32 %v534_v39, %v1131_v59  ;;  %669 = vrot.lane.b32.xlu0 %v646_v4, %s886_s25  ;;  %v544_v9 = vrot.slane %v1311_v1, 2  ;;  %v592_v44 = vmul.f32 %v591_v46, %v1131_v59 }
  0xcc   : > { %v288_v58 = vadd.f32 %v282_v10, %v230_v17  ;;  %v593_v2 = vmul.f32 %v591_v46, %v1161_v3  ;;  %v384_v14 = vsel %vm221_vm3, %v382_v50, %v383_v61  ;;  %v536_v54 = vmul.f32 %v534_v39, %v1161_v3 }
  0xcd   : > { %v441_v47 = vsel %vm279_vm4, %v439_v38, %v440_v45  ;;  %v541_v12 = vrot.slane %v535_v15, 2  ;;  %v601_v48 = vrot.slane %v1319_v35, 4  ;;  %v598_v60 = vrot.slane %v592_v44, 4 }
  0xce   : > { %v355_v40 = vadd.f32 %v352_v30, %v288_v58  ;;  %v599_v57 = vrot.slane %v593_v2, 4  ;;  %v542_v22 = vrot.slane %v536_v54, 2  ;;  %v192_v63 = vmul.f32 %v1030_v52, %v1111_v18 }
  0xcf   : > { %v226_v46 = vsel %vm221_vm3, %v223_v49, %v225_v23  ;;  %v284_v0 = vsel %vm279_vm4, %v281_v7, %v283_v26  ;;  %v511_v39 = vmul.f32 %v1291_v53, %v1131_v59  ;;  %v386_v16 = vsel %vm221_vm3, %v383_v61, %v385_v42 }
  0xd0   : > { %v390_v41 = vadd.f32 %v384_v14, %v355_v40  ;;  %v600_v62 = vsel %vm279_vm4, %v598_v60, %v599_v57  ;;  %v543_v18 = vsel %vm221_vm3, %v541_v12, %v542_v22  ;;  %v195_v8 = vadd.f32 %v192_v63, %v1027_v51 }
  0xd1   : > { %v443_v27 = vsel %vm279_vm4, %v440_v45, %v442_v5  ;;  %v545_v1 = vsel %vm221_vm3, %v542_v22, %v544_v9  ;;  %v602_v29 = vsel %vm279_vm4, %v599_v57, %v601_v48  ;;  %v353_v34 = vmul.f32 %v1288_v13, %v1138_v37 }
  0xd2   : > { %v447_v28 = vadd.f32 %v441_v47, %v390_v41  ;;  %v231_v59 = vadd.f32 %v226_v46, %v195_v8  ;;  %v512_v7 = vmul.f32 %v1291_v53, %v1161_v3  ;;  %v193_v21 = vmul.f32 %v1030_v52, %v974_v33 }
  0xd3   : > { %v354_v10 = vmul.f32 %v1288_v13, %v974_v33 }
  0xd4   : > { %v514_v35 = vadd.f32 %v511_v39, %v447_v28  ;;  %v289_v19 = vadd.f32 %v284_v0, %v231_v59  ;;  %v196_v56 = vadd.f32 %v193_v21, %v1027_v51  ;;  %v513_v51 = vmul.f32 %v1291_v53, %v974_v33 }
  0xd6   : > { %v549_v24 = vadd.f32 %v543_v18, %v514_v35  ;;  %v356_v36 = vadd.f32 %v353_v34, %v289_v19  ;;  %v232_v37 = vadd.f32 %v225_v23, %v196_v56 }
  0xd8   : > { %v606_v49 = vadd.f32 %v600_v62, %v549_v24  ;;  %v391_v55 = vadd.f32 %v386_v16, %v356_v36  ;;  %v290_v17 = vadd.f32 %v283_v26, %v232_v37 }
  0xda   : > { %v448_v11 = vadd.f32 %v443_v27, %v391_v55  ;;  %v357_v30 = vadd.f32 %v354_v10, %v290_v17 }
  0xdc   : > { %v515_v20 = vadd.f32 %v512_v7, %v448_v11  ;;  %v392_v50 = vadd.f32 %v385_v42, %v357_v30 }
  0xde   : > { %v550_v4 = vadd.f32 %v545_v1, %v515_v20  ;;  %v449_v52 = vadd.f32 %v442_v5, %v392_v50 }
  0xe0   : > { %v607_v43 = vadd.f32 %v602_v29, %v550_v4  ;;  %v516_v38 = vadd.f32 %v513_v51, %v449_v52 }
  0xe2   : > { %v551_v15 = vadd.f32 %v544_v9, %v516_v38 }
  0xe4   : > { %v608_v25 = vadd.f32 %v601_v48, %v551_v15 }
 0x119   : > { %v655_v3 = vpop.permute.xlu1 %654 }
 0x11a   : > { %v661_v44 = vadd.f32 %v655_v3, %v608_v25 }
 0x127   : > { %v651_v61 = vpop.permute.xlu1 %650 }
 0x128   : > { %v659_v13 = vadd.f32 %v651_v61, %v606_v49 }
 0x12c   : > { %v653_v31 = vpop.permute.xlu0 %652 }
 0x12d   : > { %v660_v23 = vadd.f32 %v653_v31, %v607_v43 }
 0x133   : > { %v668_v6 = vpop.permute.xlu1 %667 }
 0x134   : > { %v675_v26 = vadd.f32 %v668_v6, %v660_v23 }
 0x136   : > { %v814_v45 = vmul.f32 -1.442695, %v675_v26  ;;  %vm678_vm6 = vcmp.gt.f32.partialorder %v675_v26, 0.0 }
 0x138   : > { %843 = vpow2.f32 %v814_v45 }
 0x139   : > { %v666_v58 = vpop.permute.xlu0 %665 }
 0x13a   : > { %v674_v42 = vadd.f32 %v666_v58, %v659_v13 }
 0x13c   : > { %v813_v2 = vmul.f32 -1.442695, %v674_v42  ;;  %vm677_vm7 = vcmp.gt.f32.partialorder %v674_v42, 0.0 }
 0x13d   : > { %v670_v32 = vpop.permute.xlu0 %669 }
 0x13e   : > { %845 = vpow2.f32 %v813_v2  ;;  %v676_v5 = vadd.f32 %v670_v32, %v661_v44 }
 0x140   : > { %v815_v14 = vmul.f32 -1.442695, %v676_v5  ;;  %vm679_vm9 = vcmp.gt.f32.partialorder %v676_v5, 0.0 }
 0x142   : > { %v844_v33 = vpop.eup %843  ;;  %847 = vpow2.f32 %v815_v14 }
 0x143   : > { %v690_v53 = vadd.f32 1.0, %v844_v33 }
 0x145   : > { %849 = vrcp.f32 %v690_v53 }
 0x148   : > { %v846_v47 = vpop.eup %845 }
 0x149   : > { %v689_v12 = vadd.f32 1.0, %v846_v47 }
 0x14b   : > { %851 = vrcp.f32 %v689_v12 }
 0x14c   : > { %v848_v9 = vpop.eup %847 }
 0x14d   : > { %v691_v54 = vadd.f32 1.0, %v848_v9 }
 0x14f   : > { %v850_v48 = vpop.eup %849  ;;  %853 = vrcp.f32 %v691_v54 }
 0x150   : > { %v699_v40 = vsel %vm678_vm6, %v675_v26, %v850_v48 }
 0x151   : > { %703 = vst.msk [vmem:[%s157_s29 + $0x8] sm:$0xff] %vm701_vm5, %v699_v40 }
 0x155   : > { %v852_v60 = vpop.eup %851 }
 0x156   : > { %v698_v57 = vsel %vm677_vm7, %v674_v42, %v852_v60 }
 0x157   : > { %702 = vst.msk [vmem:[%s157_s29] sm:$0xff] %vm701_vm5, %v698_v57 }
 0x159   : > { %v854_v22 = vpop.eup %853 }
 0x15a   : > { %v700_v63 = vsel %vm679_vm9, %v676_v5, %v854_v22 }
 0x15b   : > { %705 = vst.msk [vmem:[%s157_s29 + $0x10] sm:$0x1] %vm704_vm8, %v700_v63 }
 0x15c PF: > { %s13_s9 = sadd.s32 1, %s880_s9  }
 0x15d   : > { %p10_p1 = scmp.ge.s32.totalorder %s13_s9, 4  }
 0x15f   :  { %12 = sbr.rel (!%p10_p1) target bundleno = 1 (0x1), region = 65 }
 0x166   :  { %727 = vsyncpa [#allocation3], 1 }
 0x167   :  { %729 = vsyncpa [#allocation3 + $0x1], 1 }

</bundles_post_ra>
